<compile_context>
chip_gen: v7x
topology: tpu7x:2x2x1
jax: 0.10.0
libtpu: 0.0.40
codegen_flags: <defaults>
</compile_context>

<pallas_src>
import functools
import math

import jax
import jax.numpy as jnp
from jax import lax
from jax.experimental import pallas as pl
from jax.experimental.pallas import tpu as pltpu


def _mha_kernel(q_ref, k_ref, v_ref, wq_ref, bq_ref, wk_ref, bk_ref, wv_ref, bv_ref,
                ctx_ref, *rest, num_heads, return_attn, approx_recip):
    if return_attn:
        attn_ref, kp_ref, vp_ref = rest
    else:
        attn_ref = None
        kp_ref, vp_ref = rest

    H = num_heads
    d_model = wq_ref.shape[-1]
    dim = d_model // H

    # K/V projections: once per batch element. The q-tile axis is the inner "arbitrary"
    # grid axis, so the bf16 projected K/V carried in scratch stay valid for all q tiles.
    @pl.when(pl.program_id(1) == 0)
    def _():
        k = k_ref[0].astype(jnp.bfloat16)
        v = v_ref[0].astype(jnp.bfloat16)
        kp_ref[...] = (jnp.dot(k, wk_ref[...], preferred_element_type=jnp.float32)
                       + bk_ref[...]).astype(jnp.bfloat16)
        vp_ref[...] = (jnp.dot(v, wv_ref[...], preferred_element_type=jnp.float32)
                       + bv_ref[...]).astype(jnp.bfloat16)

    # Q projection for this q tile.  1/sqrt(d_head) is already folded into Wq/bq.
    q = q_ref[0].astype(jnp.bfloat16)                                   # (tq, d_model)
    Q = (jnp.dot(q, wq_ref[...], preferred_element_type=jnp.float32)
         + bq_ref[...]).astype(jnp.bfloat16)

    kp = kp_ref[...]                                                    # (k_len, d_model) bf16
    vp = vp_ref[...]                                                    # (v_len, d_model) bf16

    # Head-major (H, len, d_head) views built once (stack of lane slices) so the per-head
    # dots become ONE batched MXU stream instead of H short K=d_head drains.
    def _heads(x):
        return jnp.stack([x[:, h * dim:(h + 1) * dim] for h in range(H)], axis=0)

    Qh, Kh, Vh = _heads(Q), _heads(kp), _heads(vp)

    # scores: (H, tq, k_len), bf16 operands, f32 accumulation.
    s = lax.dot_general(Qh, Kh, (((2,), (2,)), ((0,), (0,))),
                        preferred_element_type=jnp.float32)
    m = jnp.max(s, axis=-1, keepdims=True)
    e = jnp.exp(s - m)
    denom = jnp.sum(e, axis=-1, keepdims=True)
    if approx_recip:
        a = e * pl.reciprocal(denom, approx=True)   # EUP slot; rows sum to ~1 (approx)
    else:
        a = e / denom
    if return_attn:
        attn_ref[:, 0] = a

    # context: (H, tq, d_head), bf16 operands, f32 accumulation.
    ctx = lax.dot_general(a.astype(jnp.bfloat16), Vh, (((2,), (1,)), ((0,), (0,))),
                          preferred_element_type=jnp.float32)

    # Direct per-head stores into the lane-dense (tq, d_model) output tile (no concat).
    for h in range(H):
        ctx_ref[0, :, h * dim:(h + 1) * dim] = ctx[h]


def _q_tile_size(q_len, cap=256):
    """Largest q tile <= cap that divides q_len (multiple of 8), else the full length."""
    if q_len <= cap:
        return q_len
    for t in range(cap, 7, -1):
        if q_len % t == 0 and t % 8 == 0:
            return t
    return q_len


@functools.partial(jax.jit, static_argnames=("num_heads", "return_attn", "approx_recip"))
def multi_head_attention(query, key, value, params, num_heads, *,
                         return_attn=True, approx_recip=True):
    # TODO(synk): optional attention mask path not implemented (forward assumes mask=None).
    B, q_len, d_model = query.shape
    k_len = key.shape[1]
    v_len = value.shape[1]
    H = num_heads
    assert d_model % H == 0, "d_model % num_heads should be zero."
    assert k_len == v_len, "key and value must share the same sequence length."
    dim = d_model // H
    inv_sqrt_dim = 1.0 / math.sqrt(dim)

    # torch nn.Linear: y = x @ W^T + b.  Fold the 1/sqrt(d_head) score scale into Wq/bq.
    # Weights shipped bf16 (MXU-native, half the HBM/VMEM); the jit fuses transpose+scale+cast.
    wq_t = (jnp.asarray(params["query_proj_w"]).T * inv_sqrt_dim).astype(jnp.bfloat16)
    bq = (jnp.asarray(params["query_proj_b"]) * inv_sqrt_dim).reshape(1, d_model).astype(jnp.float32)
    wk_t = jnp.asarray(params["key_proj_w"]).T.astype(jnp.bfloat16)
    bk = jnp.asarray(params["key_proj_b"]).reshape(1, d_model).astype(jnp.float32)
    wv_t = jnp.asarray(params["value_proj_w"]).T.astype(jnp.bfloat16)
    bv = jnp.asarray(params["value_proj_b"]).reshape(1, d_model).astype(jnp.float32)

    tq = _q_tile_size(q_len)
    n_q = q_len // tq

    # Explicit VMEM budget (double-buffered blocks + scratch + in-kernel temporaries) so the
    # tiling is checked against a stated limit instead of each generation's scoped default
    # (v5e: 16 MiB default, v7x: 64 MiB physical).
    f32b, bf16b = 4, 2
    est = (2 * tq * d_model * f32b                      # q input block
           + 2 * (k_len + v_len) * d_model * f32b       # k/v input blocks
           + 2 * 3 * d_model * d_model * bf16b          # weight blocks
           + 2 * tq * d_model * f32b                    # ctx output block
           + (2 * H * tq * k_len * f32b if return_attn else 0)   # attn output block
           + (k_len + v_len) * d_model * bf16b          # projected K/V scratch
           + (tq + 2 * k_len) * d_model * bf16b         # head-major temporaries
           + 3 * H * tq * k_len * f32b)                 # scores / exp / attn temporaries
    vmem_limit = int(min(100 * 2**20, max(32 * 2**20, 2 * est)))

    kernel = functools.partial(_mha_kernel, num_heads=H,
                               return_attn=return_attn, approx_recip=approx_recip)

    ctx_shape = jax.ShapeDtypeStruct((B, q_len, d_model), jnp.float32)
    ctx_spec = pl.BlockSpec((1, tq, d_model), lambda b, i: (b, i, 0))
    if return_attn:
        out_shape = (ctx_shape,
                     jax.ShapeDtypeStruct((H, B, q_len, k_len), jnp.float32))
        out_specs = (ctx_spec,
                     pl.BlockSpec((H, 1, tq, k_len), lambda b, i: (0, b, i, 0)))
    else:
        out_shape = ctx_shape
        out_specs = ctx_spec

    result = pl.pallas_call(
        kernel,
        out_shape=out_shape,
        grid_spec=pltpu.PrefetchScalarGridSpec(
            num_scalar_prefetch=0,
            grid=(B, n_q),
            in_specs=[
                pl.BlockSpec((1, tq, d_model), lambda b, i: (b, i, 0)),     # Q tile
                pl.BlockSpec((1, k_len, d_model), lambda b, i: (b, 0, 0)),  # K (const over i)
                pl.BlockSpec((1, v_len, d_model), lambda b, i: (b, 0, 0)),  # V (const over i)
                pl.BlockSpec((d_model, d_model), lambda b, i: (0, 0)),      # Wq^T (scaled, bf16)
                pl.BlockSpec((1, d_model), lambda b, i: (0, 0)),            # bq (scaled)
                pl.BlockSpec((d_model, d_model), lambda b, i: (0, 0)),      # Wk^T (bf16)
                pl.BlockSpec((1, d_model), lambda b, i: (0, 0)),            # bk
                pl.BlockSpec((d_model, d_model), lambda b, i: (0, 0)),      # Wv^T (bf16)
                pl.BlockSpec((1, d_model), lambda b, i: (0, 0)),            # bv
            ],
            out_specs=out_specs,
            scratch_shapes=[
                pltpu.VMEM((k_len, d_model), jnp.bfloat16),   # projected K (per batch elem)
                pltpu.VMEM((v_len, d_model), jnp.bfloat16),   # projected V (per batch elem)
            ],
        ),
        compiler_params=pltpu.CompilerParams(
            dimension_semantics=("parallel", "arbitrary"),
            vmem_limit_bytes=vmem_limit,
        ),
    )(query, key, value, wq_t, bq, wk_t, bk, wv_t, bv)

    if return_attn:
        ctx, attn = result
        # attn is head-major (H, B, q, k) -> torch's (H*B, q, k) flattening is a free reshape.
        return ctx, attn.reshape(H * B, q_len, k_len)
    return result, None


def _reference(query, key, value, params, num_heads):
    """Pure-JAX (f32) mirror of the torch forward (mask=None)."""
    B, q_len, d_model = query.shape
    H = num_heads
    dim = d_model // H
    q = query @ params["query_proj_w"].T + params["query_proj_b"]
    k = key @ params["key_proj_w"].T + params["key_proj_b"]
    v = value @ params["value_proj_w"].T + params["value_proj_b"]

    def split(x):
        L = x.shape[1]
        return jnp.transpose(x.reshape(B, L, H, dim), (2, 0, 1, 3)).reshape(H * B, L, dim)

    qh, kh, vh = split(q), split(k), split(v)
    score = jnp.einsum("bqd,bkd->bqk", qh, kh) / math.sqrt(dim)
    attn = jax.nn.softmax(score, axis=-1)
    ctx = jnp.einsum("bqk,bkd->bqd", attn, vh)
    ctx = jnp.transpose(ctx.reshape(H, B, q_len, dim), (1, 2, 0, 3)).reshape(B, q_len, d_model)
    return ctx, attn


if __name__ == "__main__":
    root = jax.random.PRNGKey(0)
    B, q_len, kv_len = 2, 8, 16
    d_model, H = 32, 4

    keys = jax.random.split(root, 9)
    query = jax.random.normal(keys[0], (B, q_len, d_model), jnp.float32)
    key_t = jax.random.normal(keys[1], (B, kv_len, d_model), jnp.float32)
    value = jax.random.normal(keys[2], (B, kv_len, d_model), jnp.float32)

    params = {
        "query_proj_w": jax.random.normal(keys[3], (d_model, d_model), jnp.float32) / math.sqrt(d_model),
        "query_proj_b": 0.1 * jax.random.normal(keys[4], (d_model,), jnp.float32),
        "key_proj_w": jax.random.normal(keys[5], (d_model, d_model), jnp.float32) / math.sqrt(d_model),
        "key_proj_b": 0.1 * jax.random.normal(keys[6], (d_model,), jnp.float32),
        "value_proj_w": jax.random.normal(keys[7], (d_model, d_model), jnp.float32) / math.sqrt(d_model),
        "value_proj_b": 0.1 * jax.random.normal(keys[8], (d_model,), jnp.float32),
    }

    context, attn = multi_head_attention(query, key_t, value, params, num_heads=H)
    jax.block_until_ready((context, attn))

    assert context.shape == (B, q_len, d_model)
    assert attn.shape == (B * H, q_len, kv_len)

    ctx_ref, attn_ref = _reference(query, key_t, value, params, num_heads=H)
    assert jnp.allclose(context, ctx_ref, atol=2e-2, rtol=2e-2)
    assert jnp.allclose(attn, attn_ref, atol=2e-2, rtol=2e-2)

    # Context-only path (skips the attn-weights writeback entirely — the v5e HBM-store relief).
    ctx_only, no_attn = multi_head_attention(query, key_t, value, params,
                                             num_heads=H, return_attn=False)
    jax.block_until_ready(ctx_only)
    assert no_attn is None
    assert jnp.allclose(ctx_only, ctx_ref, atol=2e-2, rtol=2e-2)

    print("KERNEL_OK")
</pallas_src>

<mosaic_0001>
module attributes {stable_mosaic.version = 11 : i64} {
  func.func @_mha_kernel(%arg0: i32, %arg1: i32, %arg2: memref<1x8x32xf32, #tpu.memory_space<vmem>>, %arg3: memref<1x16x32xf32, #tpu.memory_space<vmem>>, %arg4: memref<1x16x32xf32, #tpu.memory_space<vmem>>, %arg5: memref<32x32xbf16, #tpu.memory_space<vmem>>, %arg6: memref<1x32xf32, #tpu.memory_space<vmem>>, %arg7: memref<32x32xbf16, #tpu.memory_space<vmem>>, %arg8: memref<1x32xf32, #tpu.memory_space<vmem>>, %arg9: memref<32x32xbf16, #tpu.memory_space<vmem>>, %arg10: memref<1x32xf32, #tpu.memory_space<vmem>>, %arg11: memref<1x8x32xf32, #tpu.memory_space<vmem>>, %arg12: memref<4x1x8x16xf32, #tpu.memory_space<vmem>>, %arg13: memref<16x32xbf16, #tpu.memory_space<vmem>>, %arg14: memref<16x32xbf16, #tpu.memory_space<vmem>>) attributes {dimension_semantics = [#tpu.dimension_semantics<parallel>, #tpu.dimension_semantics<arbitrary>], iteration_bounds = array<i64: 2, 1>, scalar_prefetch = 0 : i64, scratch_operands = 2 : i64, tpu.core_type = #tpu.core_type<tc>, window_params = [{transform_indices = @transform_0, window_bounds = array<i64: 1, 8, 32>}, {transform_indices = @transform_1, window_bounds = array<i64: 1, 16, 32>}, {transform_indices = @transform_2, window_bounds = array<i64: 1, 16, 32>}, {pipeline_mode = #tpu.pipeline_mode<synchronous>, transform_indices = @transform_3, window_bounds = array<i64: 32, 32>}, {pipeline_mode = #tpu.pipeline_mode<synchronous>, transform_indices = @transform_4, window_bounds = array<i64: 1, 32>}, {pipeline_mode = #tpu.pipeline_mode<synchronous>, transform_indices = @transform_5, window_bounds = array<i64: 32, 32>}, {pipeline_mode = #tpu.pipeline_mode<synchronous>, transform_indices = @transform_6, window_bounds = array<i64: 1, 32>}, {pipeline_mode = #tpu.pipeline_mode<synchronous>, transform_indices = @transform_7, window_bounds = array<i64: 32, 32>}, {pipeline_mode = #tpu.pipeline_mode<synchronous>, transform_indices = @transform_8, window_bounds = array<i64: 1, 32>}, {transform_indices = @transform_9, window_bounds = array<i64: 1, 8, 32>}, {transform_indices = @transform_10, window_bounds = array<i64: 4, 1, 8, 16>}]} {
    %c0_i32 = arith.constant 0 : i32
    %0 = arith.cmpi eq, %arg1, %c0_i32 : i32
    %1 = arith.extui %0 : i1 to i32
    %c0_i32_0 = arith.constant 0 : i32
    %2 = arith.cmpi ne, %1, %c0_i32_0 : i32
    scf.if %2 {
      %c0_28 = arith.constant 0 : index
      %c0_29 = arith.constant 0 : index
      %c0_30 = arith.constant 0 : index
      %77 = vector.load %arg3[%c0_28, %c0_29, %c0_30] : memref<1x16x32xf32, #tpu.memory_space<vmem>>, vector<1x16x32xf32>
      %78 = vector.shape_cast %77 : vector<1x16x32xf32> to vector<16x32xf32>
      %79 = arith.truncf %78 : vector<16x32xf32> to vector<16x32xbf16>
      %c0_31 = arith.constant 0 : index
      %c0_32 = arith.constant 0 : index
      %c0_33 = arith.constant 0 : index
      %80 = vector.load %arg4[%c0_31, %c0_32, %c0_33] : memref<1x16x32xf32, #tpu.memory_space<vmem>>, vector<1x16x32xf32>
      %81 = vector.shape_cast %80 : vector<1x16x32xf32> to vector<16x32xf32>
      %82 = arith.truncf %81 : vector<16x32xf32> to vector<16x32xbf16>
      %c0_34 = arith.constant 0 : index
      %c0_35 = arith.constant 0 : index
      %83 = vector.load %arg7[%c0_34, %c0_35] : memref<32x32xbf16, #tpu.memory_space<vmem>>, vector<32x32xbf16>
      %cst_36 = arith.constant dense<0.000000e+00> : vector<16x32xf32>
      %84 = tpu.matmul %79, %83, %cst_36 {dimension_numbers = #tpu.dot_dimension_numbers<[1], [0], [0], [1], [0, 0, 1, 1], [], []>} : vector<16x32xbf16>, vector<32x32xbf16>, vector<16x32xf32> -> vector<16x32xf32>
      %c0_37 = arith.constant 0 : index
      %c0_38 = arith.constant 0 : index
      %85 = vector.load %arg8[%c0_37, %c0_38] : memref<1x32xf32, #tpu.memory_space<vmem>>, vector<1x32xf32>
      %86 = vector.broadcast %85 : vector<1x32xf32> to vector<16x32xf32>
      %87 = arith.addf %84, %86 : vector<16x32xf32>
      %88 = arith.truncf %87 : vector<16x32xf32> to vector<16x32xbf16>
      %c0_39 = arith.constant 0 : index
      %c0_40 = arith.constant 0 : index
      %89 = vector.load %arg13[%c0_39, %c0_40] : memref<16x32xbf16, #tpu.memory_space<vmem>>, vector<16x32xbf16>
      tpu.vector_store %arg13[%c0_39, %c0_40], %88 {strides = array<i32>} : memref<16x32xbf16, #tpu.memory_space<vmem>>, vector<16x32xbf16>,
      %c0_41 = arith.constant 0 : index
      %c0_42 = arith.constant 0 : index
      %90 = vector.load %arg9[%c0_41, %c0_42] : memref<32x32xbf16, #tpu.memory_space<vmem>>, vector<32x32xbf16>
      %cst_43 = arith.constant dense<0.000000e+00> : vector<16x32xf32>
      %91 = tpu.matmul %82, %90, %cst_43 {dimension_numbers = #tpu.dot_dimension_numbers<[1], [0], [0], [1], [0, 0, 1, 1], [], []>} : vector<16x32xbf16>, vector<32x32xbf16>, vector<16x32xf32> -> vector<16x32xf32>
      %c0_44 = arith.constant 0 : index
      %c0_45 = arith.constant 0 : index
      %92 = vector.load %arg10[%c0_44, %c0_45] : memref<1x32xf32, #tpu.memory_space<vmem>>, vector<1x32xf32>
      %93 = vector.broadcast %92 : vector<1x32xf32> to vector<16x32xf32>
      %94 = arith.addf %91, %93 : vector<16x32xf32>
      %95 = arith.truncf %94 : vector<16x32xf32> to vector<16x32xbf16>
      %c0_46 = arith.constant 0 : index
      %c0_47 = arith.constant 0 : index
      %96 = vector.load %arg14[%c0_46, %c0_47] : memref<16x32xbf16, #tpu.memory_space<vmem>>, vector<16x32xbf16>
      tpu.vector_store %arg14[%c0_46, %c0_47], %95 {strides = array<i32>} : memref<16x32xbf16, #tpu.memory_space<vmem>>, vector<16x32xbf16>,
    } else {
    }
    %c0 = arith.constant 0 : index
    %c0_1 = arith.constant 0 : index
    %c0_2 = arith.constant 0 : index
    %3 = vector.load %arg2[%c0, %c0_1, %c0_2] : memref<1x8x32xf32, #tpu.memory_space<vmem>>, vector<1x8x32xf32>
    %4 = vector.shape_cast %3 : vector<1x8x32xf32> to vector<8x32xf32>
    %5 = arith.truncf %4 : vector<8x32xf32> to vector<8x32xbf16>
    %c0_3 = arith.constant 0 : index
    %c0_4 = arith.constant 0 : index
    %6 = vector.load %arg5[%c0_3, %c0_4] : memref<32x32xbf16, #tpu.memory_space<vmem>>, vector<32x32xbf16>
    %cst = arith.constant dense<0.000000e+00> : vector<8x32xf32>
    %7 = tpu.matmul %5, %6, %cst {dimension_numbers = #tpu.dot_dimension_numbers<[1], [0], [0], [1], [0, 0, 1, 1], [], []>} : vector<8x32xbf16>, vector<32x32xbf16>, vector<8x32xf32> -> vector<8x32xf32>
    %c0_5 = arith.constant 0 : index
    %c0_6 = arith.constant 0 : index
    %8 = vector.load %arg6[%c0_5, %c0_6] : memref<1x32xf32, #tpu.memory_space<vmem>>, vector<1x32xf32>
    %9 = vector.broadcast %8 : vector<1x32xf32> to vector<8x32xf32>
    %10 = arith.addf %7, %9 : vector<8x32xf32>
    %11 = arith.truncf %10 : vector<8x32xf32> to vector<8x32xbf16>
    %c0_7 = arith.constant 0 : index
    %c0_8 = arith.constant 0 : index
    %12 = vector.load %arg13[%c0_7, %c0_8] : memref<16x32xbf16, #tpu.memory_space<vmem>>, vector<16x32xbf16>
    %c0_9 = arith.constant 0 : index
    %c0_10 = arith.constant 0 : index
    %13 = vector.load %arg14[%c0_9, %c0_10] : memref<16x32xbf16, #tpu.memory_space<vmem>>, vector<16x32xbf16>
    %14 = vector.extract_strided_slice %11 {offsets = [0, 0], sizes = [8, 8], strides = [1, 1]} : vector<8x32xbf16> to vector<8x8xbf16>
    %15 = vector.extract_strided_slice %11 {offsets = [0, 8], sizes = [8, 8], strides = [1, 1]} : vector<8x32xbf16> to vector<8x8xbf16>
    %16 = vector.extract_strided_slice %11 {offsets = [0, 16], sizes = [8, 8], strides = [1, 1]} : vector<8x32xbf16> to vector<8x8xbf16>
    %17 = vector.extract_strided_slice %11 {offsets = [0, 24], sizes = [8, 8], strides = [1, 1]} : vector<8x32xbf16> to vector<8x8xbf16>
    %18 = vector.shape_cast %14 : vector<8x8xbf16> to vector<1x8x8xbf16>
    %19 = vector.shape_cast %15 : vector<8x8xbf16> to vector<1x8x8xbf16>
    %20 = vector.shape_cast %16 : vector<8x8xbf16> to vector<1x8x8xbf16>
    %21 = vector.shape_cast %17 : vector<8x8xbf16> to vector<1x8x8xbf16>
    %22 = tpu.concatenate %18, %19, %20, %21 in 0 : vector<1x8x8xbf16>, vector<1x8x8xbf16>, vector<1x8x8xbf16>, vector<1x8x8xbf16> -> vector<4x8x8xbf16>
    %23 = vector.extract_strided_slice %12 {offsets = [0, 0], sizes = [16, 8], strides = [1, 1]} : vector<16x32xbf16> to vector<16x8xbf16>
    %24 = vector.extract_strided_slice %12 {offsets = [0, 8], sizes = [16, 8], strides = [1, 1]} : vector<16x32xbf16> to vector<16x8xbf16>
    %25 = vector.extract_strided_slice %12 {offsets = [0, 16], sizes = [16, 8], strides = [1, 1]} : vector<16x32xbf16> to vector<16x8xbf16>
    %26 = vector.extract_strided_slice %12 {offsets = [0, 24], sizes = [16, 8], strides = [1, 1]} : vector<16x32xbf16> to vector<16x8xbf16>
    %27 = vector.shape_cast %23 : vector<16x8xbf16> to vector<1x16x8xbf16>
    %28 = vector.shape_cast %24 : vector<16x8xbf16> to vector<1x16x8xbf16>
    %29 = vector.shape_cast %25 : vector<16x8xbf16> to vector<1x16x8xbf16>
    %30 = vector.shape_cast %26 : vector<16x8xbf16> to vector<1x16x8xbf16>
    %31 = tpu.concatenate %27, %28, %29, %30 in 0 : vector<1x16x8xbf16>, vector<1x16x8xbf16>, vector<1x16x8xbf16>, vector<1x16x8xbf16> -> vector<4x16x8xbf16>
    %32 = vector.extract_strided_slice %13 {offsets = [0, 0], sizes = [16, 8], strides = [1, 1]} : vector<16x32xbf16> to vector<16x8xbf16>
    %33 = vector.extract_strided_slice %13 {offsets = [0, 8], sizes = [16, 8], strides = [1, 1]} : vector<16x32xbf16> to vector<16x8xbf16>
    %34 = vector.extract_strided_slice %13 {offsets = [0, 16], sizes = [16, 8], strides = [1, 1]} : vector<16x32xbf16> to vector<16x8xbf16>
    %35 = vector.extract_strided_slice %13 {offsets = [0, 24], sizes = [16, 8], strides = [1, 1]} : vector<16x32xbf16> to vector<16x8xbf16>
    %36 = vector.shape_cast %32 : vector<16x8xbf16> to vector<1x16x8xbf16>
    %37 = vector.shape_cast %33 : vector<16x8xbf16> to vector<1x16x8xbf16>
    %38 = vector.shape_cast %34 : vector<16x8xbf16> to vector<1x16x8xbf16>
    %39 = vector.shape_cast %35 : vector<16x8xbf16> to vector<1x16x8xbf16>
    %40 = tpu.concatenate %36, %37, %38, %39 in 0 : vector<1x16x8xbf16>, vector<1x16x8xbf16>, vector<1x16x8xbf16>, vector<1x16x8xbf16> -> vector<4x16x8xbf16>
    %cst_11 = arith.constant dense<0.000000e+00> : vector<4x8x16xf32>
    %41 = tpu.matmul %22, %31, %cst_11 {dimension_numbers = #tpu.dot_dimension_numbers<[2], [2], [1], [1], [0, 0, 0, 1, 1, 1], [0], [0]>} : vector<4x8x8xbf16>, vector<4x16x8xbf16>, vector<4x8x16xf32> -> vector<4x8x16xf32>
    %cst_12 = arith.constant dense<0xFF800000> : vector<4x8xf32>
    %42 = vector.multi_reduction <maximumf>, %41, %cst_12 [2] : vector<4x8x16xf32> to vector<4x8xf32>
    %43 = vector.shape_cast %42 : vector<4x8xf32> to vector<4x8x1xf32>
    %44 = vector.broadcast %43 : vector<4x8x1xf32> to vector<4x8x16xf32>
    %45 = arith.subf %41, %44 : vector<4x8x16xf32>
    %46 = math.exp %45 : vector<4x8x16xf32>
    %cst_13 = arith.constant dense<0.000000e+00> : vector<4x8xf32>
    %47 = vector.multi_reduction <add>, %46, %cst_13 [2] : vector<4x8x16xf32> to vector<4x8xf32>
    %48 = vector.shape_cast %47 : vector<4x8xf32> to vector<4x8x1xf32>
    %49 = tpu.reciprocal %48 {approx = true} : vector<4x8x1xf32> -> vector<4x8x1xf32>
    %50 = vector.broadcast %49 : vector<4x8x1xf32> to vector<4x8x16xf32>
    %51 = arith.mulf %46, %50 : vector<4x8x16xf32>
    %c0_14 = arith.constant 0 : index
    %c0_15 = arith.constant 0 : index
    %c0_16 = arith.constant 0 : index
    %c0_17 = arith.constant 0 : index
    %52 = vector.load %arg12[%c0_14, %c0_15, %c0_16, %c0_17] : memref<4x1x8x16xf32, #tpu.memory_space<vmem>>, vector<4x1x8x16xf32>
    %53 = vector.shape_cast %52 : vector<4x1x8x16xf32> to vector<4x8x16xf32>
    %54 = vector.shape_cast %51 : vector<4x8x16xf32> to vector<4x1x8x16xf32>
    tpu.vector_store %arg12[%c0_14, %c0_15, %c0_16, %c0_17], %54 {strides = array<i32>} : memref<4x1x8x16xf32, #tpu.memory_space<vmem>>, vector<4x1x8x16xf32>,
    %55 = arith.truncf %51 : vector<4x8x16xf32> to vector<4x8x16xbf16>
    %cst_18 = arith.constant dense<0.000000e+00> : vector<4x8x8xf32>
    %56 = tpu.matmul %55, %40, %cst_18 {dimension_numbers = #tpu.dot_dimension_numbers<[2], [1], [1], [2], [0, 0, 0, 1, 1, 2], [0], [0]>} : vector<4x8x16xbf16>, vector<4x16x8xbf16>, vector<4x8x8xf32> -> vector<4x8x8xf32>
    %57 = vector.extract_strided_slice %56 {offsets = [0, 0, 0], sizes = [1, 8, 8], strides = [1, 1, 1]} : vector<4x8x8xf32> to vector<1x8x8xf32>
    %58 = vector.shape_cast %57 : vector<1x8x8xf32> to vector<8x8xf32>
    %c0_19 = arith.constant 0 : index
    %c0_20 = arith.constant 0 : index
    %c0_21 = arith.constant 0 : index
    %59 = vector.load %arg11[%c0_19, %c0_20, %c0_21] : memref<1x8x32xf32, #tpu.memory_space<vmem>>, vector<1x8x8xf32>
    %60 = vector.shape_cast %59 : vector<1x8x8xf32> to vector<8x8xf32>
    %61 = vector.shape_cast %58 : vector<8x8xf32> to vector<1x8x8xf32>
    tpu.vector_store %arg11[%c0_19, %c0_20, %c0_21], %61 {strides = array<i32>} : memref<1x8x32xf32, #tpu.memory_space<vmem>>, vector<1x8x8xf32>,
    %62 = vector.extract_strided_slice %56 {offsets = [1, 0, 0], sizes = [1, 8, 8], strides = [1, 1, 1]} : vector<4x8x8xf32> to vector<1x8x8xf32>
    %63 = vector.shape_cast %62 : vector<1x8x8xf32> to vector<8x8xf32>
    %c0_22 = arith.constant 0 : index
    %c0_23 = arith.constant 0 : index
    %c8 = arith.constant 8 : index
    %64 = vector.load %arg11[%c0_22, %c0_23, %c8] : memref<1x8x32xf32, #tpu.memory_space<vmem>>, vector<1x8x8xf32>
    %65 = vector.shape_cast %64 : vector<1x8x8xf32> to vector<8x8xf32>
    %66 = vector.shape_cast %63 : vector<8x8xf32> to vector<1x8x8xf32>
    tpu.vector_store %arg11[%c0_22, %c0_23, %c8], %66 {strides = array<i32>} : memref<1x8x32xf32, #tpu.memory_space<vmem>>, vector<1x8x8xf32>,
    %67 = vector.extract_strided_slice %56 {offsets = [2, 0, 0], sizes = [1, 8, 8], strides = [1, 1, 1]} : vector<4x8x8xf32> to vector<1x8x8xf32>
    %68 = vector.shape_cast %67 : vector<1x8x8xf32> to vector<8x8xf32>
    %c0_24 = arith.constant 0 : index
    %c0_25 = arith.constant 0 : index
    %c16 = arith.constant 16 : index
    %69 = vector.load %arg11[%c0_24, %c0_25, %c16] : memref<1x8x32xf32, #tpu.memory_space<vmem>>, vector<1x8x8xf32>
    %70 = vector.shape_cast %69 : vector<1x8x8xf32> to vector<8x8xf32>
    %71 = vector.shape_cast %68 : vector<8x8xf32> to vector<1x8x8xf32>
    tpu.vector_store %arg11[%c0_24, %c0_25, %c16], %71 {strides = array<i32>} : memref<1x8x32xf32, #tpu.memory_space<vmem>>, vector<1x8x8xf32>,
    %72 = vector.extract_strided_slice %56 {offsets = [3, 0, 0], sizes = [1, 8, 8], strides = [1, 1, 1]} : vector<4x8x8xf32> to vector<1x8x8xf32>
    %73 = vector.shape_cast %72 : vector<1x8x8xf32> to vector<8x8xf32>
    %c0_26 = arith.constant 0 : index
    %c0_27 = arith.constant 0 : index
    %c24 = arith.constant 24 : index
    %74 = vector.load %arg11[%c0_26, %c0_27, %c24] : memref<1x8x32xf32, #tpu.memory_space<vmem>>, vector<1x8x8xf32>
    %75 = vector.shape_cast %74 : vector<1x8x8xf32> to vector<8x8xf32>
    %76 = vector.shape_cast %73 : vector<8x8xf32> to vector<1x8x8xf32>
    tpu.vector_store %arg11[%c0_26, %c0_27, %c24], %76 {strides = array<i32>} : memref<1x8x32xf32, #tpu.memory_space<vmem>>, vector<1x8x8xf32>,
    return
  }
  func.func @transform_0(%arg0: i32, %arg1: i32) -> (i32, i32, i32) {
    %c0_i32 = arith.constant 0 : i32
    %c0_i32_0 = arith.constant 0 : i32
    return %arg0, %arg1, %c0_i32 : i32, i32, i32
  }
  func.func @transform_1(%arg0: i32, %arg1: i32) -> (i32, i32, i32) {
    %c0_i32 = arith.constant 0 : i32
    %c0_i32_0 = arith.constant 0 : i32
    %c0_i32_1 = arith.constant 0 : i32
    return %arg0, %c0_i32, %c0_i32_0 : i32, i32, i32
  }
  func.func @transform_2(%arg0: i32, %arg1: i32) -> (i32, i32, i32) {
    %c0_i32 = arith.constant 0 : i32
    %c0_i32_0 = arith.constant 0 : i32
    %c0_i32_1 = arith.constant 0 : i32
    return %arg0, %c0_i32, %c0_i32_0 : i32, i32, i32
  }
  func.func @transform_3(%arg0: i32, %arg1: i32) -> (i32, i32) {
    %c0_i32 = arith.constant 0 : i32
    %c0_i32_0 = arith.constant 0 : i32
    %c0_i32_1 = arith.constant 0 : i32
    return %c0_i32, %c0_i32_0 : i32, i32
  }
  func.func @transform_4(%arg0: i32, %arg1: i32) -> (i32, i32) {
    %c0_i32 = arith.constant 0 : i32
    %c0_i32_0 = arith.constant 0 : i32
    %c0_i32_1 = arith.constant 0 : i32
    return %c0_i32, %c0_i32_0 : i32, i32
  }
  func.func @transform_5(%arg0: i32, %arg1: i32) -> (i32, i32) {
    %c0_i32 = arith.constant 0 : i32
    %c0_i32_0 = arith.constant 0 : i32
    %c0_i32_1 = arith.constant 0 : i32
    return %c0_i32, %c0_i32_0 : i32, i32
  }
  func.func @transform_6(%arg0: i32, %arg1: i32) -> (i32, i32) {
    %c0_i32 = arith.constant 0 : i32
    %c0_i32_0 = arith.constant 0 : i32
    %c0_i32_1 = arith.constant 0 : i32
    return %c0_i32, %c0_i32_0 : i32, i32
  }
  func.func @transform_7(%arg0: i32, %arg1: i32) -> (i32, i32) {
    %c0_i32 = arith.constant 0 : i32
    %c0_i32_0 = arith.constant 0 : i32
    %c0_i32_1 = arith.constant 0 : i32
    return %c0_i32, %c0_i32_0 : i32, i32
  }
  func.func @transform_8(%arg0: i32, %arg1: i32) -> (i32, i32) {
    %c0_i32 = arith.constant 0 : i32
    %c0_i32_0 = arith.constant 0 : i32
    %c0_i32_1 = arith.constant 0 : i32
    return %c0_i32, %c0_i32_0 : i32, i32
  }
  func.func @transform_9(%arg0: i32, %arg1: i32) -> (i32, i32, i32) {
    %c0_i32 = arith.constant 0 : i32
    %c0_i32_0 = arith.constant 0 : i32
    return %arg0, %arg1, %c0_i32 : i32, i32, i32
  }
  func.func @transform_10(%arg0: i32, %arg1: i32) -> (i32, i32, i32, i32) {
    %c0_i32 = arith.constant 0 : i32
    %c0_i32_0 = arith.constant 0 : i32
    %c0_i32_1 = arith.constant 0 : i32
    return %c0_i32, %arg0, %arg1, %c0_i32_0 : i32, i32, i32, i32
  }
}

</mosaic_0001>

<bundles_post_ra>
// kernel: multi_head_attention.1
= control target key start
LH: loop header
LB: loop body
LE: loop exit
PB: predicated region body
PF: predicated region fallthrough
CT: control target
= control target key end

     0   :  { %s1958_s0 = inlined_call_operand.vmem [shape: f32[2,8,32], index: 0, kind: input, shape index: {}]   ;;  %s1959_s1 = inlined_call_operand.vmem [shape: f32[2,16,32], index: 1, kind: input, shape index: {}]   ;;  %s1960_s2 = inlined_call_operand.vmem [shape: f32[2,16,32], index: 2, kind: input, shape index: {}]   ;;  %s1961_s3 = inlined_call_operand.vmem [shape: bf16[32,32], index: 3, kind: input, shape index: {}]   ;;  %s1962_s4 = inlined_call_operand.vmem [shape: f32[1,32], index: 4, kind: input, shape index: {}]   ;;  %s1963_s5 = inlined_call_operand.vmem [shape: bf16[32,32], index: 5, kind: input, shape index: {}]   ;;  %s1964_s6 = inlined_call_operand.vmem [shape: f32[1,32], index: 6, kind: input, shape index: {}]   ;;  %s1965_s7 = inlined_call_operand.vmem [shape: bf16[32,32], index: 7, kind: input, shape index: {}]   ;;  %s1966_s8 = inlined_call_operand.vmem [shape: f32[1,32], index: 8, kind: input, shape index: {}]   ;;  %s1967_s9 = inlined_call_operand.hbm [shape: f32[2,8,32], index: 9, kind: output, shape index: {0}]   ;;  %s1968_s10 = inlined_call_operand.hbm [shape: f32[4,2,8,16], index: 10, kind: output, shape index: {1}]  }
   0x1   :  { %1970 = sst [smem:[#allocation10_spill]] %s1958_s0 }
   0x2   :  { %1971 = sst [smem:[#allocation11_spill]] %s1959_s1 }
   0x3   :  { %1972 = sst [smem:[#allocation12_spill]] %s1963_s5 }
   0x4   :  { %16 = vsyncpa [#allocation5], 0 }
   0x5   :  { %18 = vsyncpa [#allocation5 + $0x1], 0 }
   0x6   :  { %19 = vsyncpa [#allocation7], 0 }
   0x7   :  { %21 = vsyncpa [#allocation7 + $0x1], 0  ;;  %s1680_s13 = smov 0   ;;  %s1682_s14 = smov 0  }
   0x8   :  { %s1684_s15 = smov 0   ;;  %s1686_s16 = smov 0  }
   0x9   :  { %s1688_s17 = smov 0   ;;  %s1690_s18 = smov 0  }
   0xa LB: > { %s1272_s19 = sadd.s32 4294967295, %s1611_s18   ;;  %s1273_s20 = sadd.s32 4294967294, %s1611_s18   ;;  %s1611_s18 = sphi %s1690_s18, %s27_s18   ;;  %s1607_s17 = sphi %s1688_s17, %s1984_s17   ;;  %s1603_s16 = sphi %s1686_s16, %s1983_s16   ;;  %s1599_s15 = sphi %s1684_s15, %s1982_s15   ;;  %s1595_s14 = sphi %s1682_s14, %s1981_s14   ;;  %s1591_s13 = sphi %s1680_s13, %s1980_s13  }
   0xb   : > { %s39_s21 = sadd.s32 1, %s1607_s17  ;;  %s254_s22 = sadd.s32 1, %s1599_s15 }
   0xc   : > { %p41_p0 = scmp.ge.s32.totalorder %s39_s21, 2  ;;  %p264_p1 = scmp.ne.s32.totalorder %s1599_s15, %s1595_s14 }
   0xd   : > { %p265_p2 = scmp.eq.s32.totalorder %s1272_s19, 1  ;;  %p270_p3 = scmp.ne.s32.totalorder %s1595_s14, %s1591_s13 }
   0xe   : > { %s1986_s21 = smov (%p41_p0, %s39_s21), 0  ;;  %p271_p5 = scmp.eq.s32.totalorder %s1273_s20, 1 }
   0xf   : > { %p1720_p4 = por %p265_p2, %p264_p1  ;;  %s249_s24 = ssub.s32 %s1607_s17, %s1986_s21 }
  0x10   : > { %p1276_p6 = scmp.ge.s32.totalorder %s1611_s18, 1  ;;  %p252_p7 = scmp.eq.s32.totalorder %s249_s24, 0 }
  0x11   : > { %p1727_p8 = por %p271_p5, %p270_p3  ;;  %p361_p9 = scmp.lt.s32.totalorder %s1611_s18, 3 }
  0x12   : > { %s1733_s26 = scalar_select %p252_p7, %s1599_s15, %s254_s22  }
  0x13   : > { %p362_p10 = pnand %p1276_p6, %p361_p9 }
  0x14   : > { %s1975_s5 = sld [smem:[#allocation12_spill]] (!%p362_p10)  ;;  %v1613_v1 = vmov (!%p362_p10), 0.0   ;;  %vm1614_vm0 = vmmov (!%p362_p10), 0   ;;  %p416_p11 = scmp.lt.s32.totalorder (!%p362_p10), %s1603_s16, 1  ;;  %vm467_vm1 = vcmask (!%p362_p10), 261120   ;;  %v1481_v5 = vld [vmem:[%s1961_s3] sm:$0xff] (!%p362_p10)  }
  0x15   : > { %365 = sbr.rel (%p362_p10) target bundleno = 1272 (0x4f8), region = 56  ;;  %1337 = vmatprep.subr.bf16.mxu0 (!%p362_p10), %v1613_v1  ;;  %1345 = vmatprep.subr.bf16.mxu1 (!%p362_p10), %v1613_v1  ;;  %s1976_s1 = sld [smem:[#allocation11_spill]] (!%p362_p10)  ;;  %v1482_v7 = vld [vmem:[%s1961_s3 + $0x8] sm:$0xff] (!%p362_p10)   ;;  %v1483_v10 = vld [vmem:[%s1965_s7] sm:$0xff] (!%p362_p10)   ;;  %vm679_vm2 = vcmask (!%p362_p10), 64512   ;;  %vm864_vm3 = vcmask (!%p362_p10), 130048  }
  0x16   : > { %1341 = vmatprep.mubr.msk.bf16.mxu0 (!%p362_p10), %vm1614_vm0, %v1613_v1  ;;  %1349 = vmatprep.mubr.msk.bf16.mxu1 (!%p362_p10), %vm1614_vm0, %v1613_v1  ;;  %s1977_s0 = sld [smem:[#allocation10_spill]] (!%p362_p10)  ;;  %v1484_v11 = vld [vmem:[%s1965_s7 + $0x8] sm:$0xff] (!%p362_p10)   ;;  %v1284_v15 = vld [vmem:[%s1964_s6] ss:$0 sm:$0xff] (!%p362_p10)  ;;  %s1616_s22 = smov (!%p362_p10), 104  }
  0x17   : > { %1346 = vmatpush3.bf16.msra.mxu1 (!%p362_p10), %v1483_v10  ;;  %v1292_v23 = vld [vmem:[%s1962_s4] ss:$0 sm:$0xff] (!%p362_p10)  ;;  %s1840_s28 = sand.u32 (!%p362_p10), 1, %s1595_s14  }
  0x18   : > { %1347 = vmatprep.subr.bf16.mxu1 (!%p362_p10), %v1613_v1  ;;  %v1288_v32 = vld [vmem:[%s1966_s8] ss:$0 sm:$0xff] (!%p362_p10) }
  0x1a   : > { %v1479_v0 = vld [vmem:[%s1975_s5] sm:$0xff] (!%p362_p10)   ;;  %v1480_v2 = vld [vmem:[%s1975_s5 + $0x8] sm:$0xff] (!%p362_p10)  }
  0x1b   : > { %1338 = vmatpush3.bf16.msra.mxu0 (!%p362_p10), %v1479_v0  ;;  %1348 = vmatpush3.bf16.msra.mxu1 (!%p362_p10), %v1484_v11 }
  0x1c   : > { %1339 = vmatprep.subr.bf16.mxu0 %v1613_v1  ;;  %s1750_s11 = scalar_select %p416_p11, %s1603_s16, 1  ;;  %1361 = vmatprep.subr.bf16.mxu1 %v1613_v1 }
  0x1e   : > { %s1310_s12 = sshll.u32 %s1750_s11, 4  ;;  %s1279_s19 = sshll.u32 %s1750_s11, 3 }
  0x1f   : > { %1340 = vmatpush3.bf16.msra.mxu0 %v1480_v2  ;;  %s427_s24 = scalar_lea.vmem %s1976_s1, %s1310_s12  ;;  %s422_s5 = scalar_lea.vmem %s1977_s0, %s1279_s19 }
  0x20   : > { %1353 = vmatprep.subr.bf16.mxu0 %v1613_v1  ;;  %v438_v3 = vld [vmem:[%s427_s24] sm:$0xff]  ;;  %v439_v4 = vld [vmem:[%s427_s24 + $0x8] sm:$0xff]  ;;  %s432_s29 = scalar_lea.vmem %s1960_s2, %s1310_s12  ;;  %s1615_s19 = smov 120  }
  0x21   : > { %v440_v6 = vpack.c.bf16 %v439_v4, %v438_v3  ;;  %v583_v8 = vld [vmem:[%s422_s5] sm:$0xff]  ;;  %v442_v13 = vld [vmem:[%s432_s29 + $0x8] sm:$0xff]  ;;  %s1617_s24 = smov 112   ;;  %s1277_s11 = sshll.u32 %s1840_s28, 3 }
  0x22   : > { %v584_v9 = vpack.c.bf16 %v583_v8, %v583_v8  ;;  %v441_v12 = vld [vmem:[%s432_s29] sm:$0xff]  ;;  %s1278_s29 = sshll.u32 %s1840_s28, 5  ;;  %s1862_s12 = scalar_lea.vmem [#allocation4], %s1277_s11 }
  0x23   : > { %1342 = vmatmul.mubr.msk.bf16.vlgmr.msra.gmra.mrb[0].mxu0 %vm467_vm1, %v440_v6  ;;  %v443_v14 = vpack.c.bf16 %v442_v13, %v441_v12  ;;  %s1843_s30 = scalar_lea.vmem [#allocation6], %s1278_s29 }
  0x24   : > { %1354 = vmatpush3.bf16.msra.mxu0 %v1481_v5  ;;  %1357 = vmatprep.mubr.msk.bf16.mxu0 %vm1614_vm0, %v1613_v1  ;;  %s1141_s20 = sshll.u32 %s1843_s30, 4  ;;  %s1868_s20 = int_to_ptr.vmem [resolvable:$true] %s1141_s20 }
  0x25   : > { %1355 = vmatprep.subr.bf16.mxu0 %v1613_v1  ;;  %1350 = vmatmul.mubr.msk.bf16.vlgmr.msra.gmra.mrb[0].mxu1 %vm467_vm1, %v443_v14  ;;  %s1501_s29 = scalar_lea.vmem %s1868_s20, 512 }
  0x26   : > { %1363 = vmatprep.mubr.msk.bf16.mxu1 %vm1614_vm0, %v1613_v1  ;;  %p1502_p12 = scmp.ne.s32.totalorder %s1868_s20, %s1501_s29 }
  0x28   : > { %1356 = vmatpush3.bf16.msra.mxu0 %v1482_v7  ;;  %p1503_p13 = pnand %p1502_p12, %p1720_p4 }
  0x29   : > { %1367 = vmatprep.subr.bf16.mxu0 %v1613_v1 }
  0x2a   : > { %p1504_p0 = pneg %p1503_p13 }
  0x2b   : > { %1358 = vmatmul.mubr.msk.bf16.vlgmr.msra.gmra.mrb[4].mxu0 %vm467_vm1, %v584_v9 }
  0x2c   : > { %1369 = vmatprep.mubr.msk.bf16.mxu0 %vm1614_vm0, %v1613_v1 }
  0xf6   : > { %v505_v16 = vpop.f32.mrb[0].mxu0 }
  0xf7   : > { %v1343_v17 = vpop.f32.mrb[1].mxu0  ;;  %v506_v19 = vadd.f32 %v1284_v15, %v505_v16 }
  0xf8   : > { %v508_v18 = vpop.f32.mrb[2].mxu0  ;;  %v574_v33 = vpop.f32.mrb[0].mxu1 }
  0xf9   : > { %v509_v20 = vadd.f32 %v1284_v15, %v508_v18  ;;  %v1344_v21 = vpop.f32.mrb[3].mxu0  ;;  %v575_v34 = vadd.f32 %v1288_v32, %v574_v33  ;;  %v1351_v35 = vpop.f32.mrb[1].mxu1 }
  0xfa   : > { %v577_v36 = vpop.f32.mrb[2].mxu1 }
  0xfb   : > { %v512_v22 = vpack.c.bf16 %v509_v20, %v506_v19  ;;  %v578_v37 = vadd.f32 %v1288_v32, %v577_v36  ;;  %v1352_v38 = vpop.f32.mrb[3].mxu1 }
  0xfd   : > { %513 = vst.msk [vmem:[#allocation2] sm:$0xff] %vm467_vm1, %v512_v22  ;;  %v581_v39 = vpack.c.bf16 %v578_v37, %v575_v34 }
  0xfe   : > { %v646_v24 = vpop.f32.mrb[4].mxu0 }
  0xff   : > { %v647_v25 = vadd.f32 %v1292_v23, %v646_v24  ;;  %v1359_v26 = vpop.f32.mrb[5].mxu0  ;;  %582 = vst.msk [vmem:[#allocation3] sm:$0xff] %vm467_vm1, %v581_v39 }
 0x100   : > { %v649_v27 = vpop.f32.mrb[6].mxu0 }
 0x101   : > { %v652_v28 = vpack.c.bf16 %v647_v25, %v647_v25  ;;  %v1360_v29 = vpop.f32.mrb[7].mxu0 }
 0x103   : > { %656 = vrot.lane.b32.xlu1 %v652_v28, %s1615_s19 }
 0x104   : > { %v653_v30 = vld [vmem:[#allocation2] sm:$0xff] }
 0x105   : > { %663 = vrot.lane.b32.xlu0 %v653_v30, %s1615_s19  ;;  %v684_v31 = vsel %vm679_vm2, %v653_v30, 0 }
 0x106   : > { %1362 = vmatpush3.bf16.xpose.msra.mxu1 %v684_v31  ;;  %v654_v49 = vld [vmem:[#allocation3] sm:$0xff] }
 0x107   : > { %667 = vrot.lane.b32.xlu1 %v653_v30, %s1616_s22  ;;  %1373 = vmatprep.subr.bf16.mxu1 %v1613_v1 }
 0x109   : > { %665 = vrot.lane.b32.xlu0 %v653_v30, %s1617_s24 }
 0x10b   : > { %660 = vrot.lane.b32.xlu1 %v652_v28, %s1616_s22 }
 0x10d   : > { %658 = vrot.lane.b32.xlu0 %v652_v28, %s1617_s24  ;;  %1364 = vmatmul.mubr.msk.bf16.vlgmr.msra.gmra.mrb[4].mxu1 %vm679_vm2, %v652_v28 }
 0x10e   : > { %1375 = vmatprep.mubr.msk.bf16.mxu1 %vm1614_vm0, %v1613_v1 }
 0x175   : > { %v657_v40 = vpop.permute.xlu1 %656 }
 0x177   : > { %v664_v41 = vpop.permute.xlu0 %663 }
 0x178   : > { %v730_v42 = vsel %vm679_vm2, %v664_v41, 0 }
 0x179   : > { %1368 = vmatpush3.bf16.xpose.msra.mxu0 %v730_v42  ;;  %v668_v45 = vpop.permute.xlu1 %667 }
 0x17a   : > { %1379 = vmatprep.subr.bf16.mxu0 %v1613_v1  ;;  %v822_v46 = vsel %vm679_vm2, %v668_v45, 0 }
 0x17b   : > { %v666_v43 = vpop.permute.xlu0 %665 }
 0x17c   : > { %v776_v44 = vsel %vm679_vm2, %v666_v43, 0 }
 0x17d   : > { %1374 = vmatpush3.bf16.xpose.msra.mxu1 %v776_v44  ;;  %v661_v48 = vpop.permute.xlu1 %660 }
 0x17e   : > { %1385 = vmatprep.subr.bf16.mxu1 %v1613_v1 }
 0x17f   : > { %v659_v47 = vpop.permute.xlu0 %658 }
 0x180   : > { %1370 = vmatmul.mubr.msk.bf16.vlgmr.msra.gmra.mrb[8].mxu0 %vm679_vm2, %v657_v40 }
 0x181   : > { %1380 = vmatpush3.bf16.xpose.msra.mxu0 %v822_v46  ;;  %1381 = vmatprep.mubr.msk.bf16.mxu0 %vm1614_vm0, %v1613_v1 }
 0x182   : > { %1391 = vmatprep.subr.bf16.mxu0 %v1613_v1 }
 0x184   : > { %1376 = vmatmul.mubr.msk.bf16.vlgmr.msra.gmra.mrb[8].mxu1 %vm679_vm2, %v659_v47 }
 0x185   : > { %1387 = vmatprep.mubr.msk.bf16.mxu1 %vm1614_vm0, %v1613_v1  ;;  %1386 = vmatpush3.bf16.msra.mxu1 %v654_v49 }
 0x186   : > { %1397 = vmatprep.subr.bf16.mxu1 %v1613_v1 }
 0x188   : > { %1382 = vmatmul.mubr.msk.bf16.vlgmr.msra.gmra.mrb[12].mxu0 %vm679_vm2, %v661_v48 }
 0x189   : > { %1393 = vmatprep.mubr.msk.bf16.mxu0 %vm1614_vm0, %v1613_v1 }
 0x1e0   : > { %v720_v50 = vpop.f32.mrb[4].mxu1 }
 0x1e1   : > { %v1365_v51 = vpop.f32.mrb[5].mxu1  ;;  %v865_v52 = vsel %vm864_vm3, %v720_v50, -inf }
 0x1e2   : > { %866 = vmax.xlane.f32.xlu0 %v865_v52  ;;  %v723_v53 = vpop.f32.mrb[6].mxu1 }
 0x1e3   : > { %v1366_v54 = vpop.f32.mrb[7].mxu1 }
 0x253   : > { %v766_v55 = vpop.f32.mrb[8].mxu0 }
 0x254   : > { %v1371_v56 = vpop.f32.mrb[9].mxu0  ;;  %v868_v57 = vsel %vm864_vm3, %v766_v55, -inf }
 0x255   : > { %869 = vmax.xlane.f32.xlu1 %v868_v57  ;;  %v769_v58 = vpop.f32.mrb[10].mxu0 }
 0x256   : > { %v1372_v59 = vpop.f32.mrb[11].mxu0 }
 0x257   : > { %v812_v60 = vpop.f32.mrb[8].mxu1 }
 0x258   : > { %v1377_v61 = vpop.f32.mrb[9].mxu1  ;;  %v871_v62 = vsel %vm864_vm3, %v812_v60, -inf }
 0x259   : > { %872 = vmax.xlane.f32.xlu0 %v871_v62  ;;  %v815_v63 = vpop.f32.mrb[10].mxu1 }
 0x25a   : > { %v1378_v0 = vpop.f32.mrb[11].mxu1 }
 0x25b   : > { %v858_v2 = vpop.f32.mrb[12].mxu0 }
 0x25c   : > { %v1383_v3 = vpop.f32.mrb[13].mxu0  ;;  %v874_v4 = vsel %vm864_vm3, %v858_v2, -inf }
 0x25d   : > { %875 = vmax.xlane.f32.xlu0 %v874_v4  ;;  %v861_v5 = vpop.f32.mrb[14].mxu0 }
 0x25e   : > { %v1384_v6 = vpop.f32.mrb[15].mxu0 }
 0x266   : > { %670 = vrot.lane.b32.xlu1 %v654_v49, %s1615_s19  ;;  %s1969_s19 = sshll.u32 %s1603_s16, 7 }
 0x267   : > { %s1875_s5 = scalar_lea.hbm %s1968_s10, %s1969_s19 }
 0x26f   : > { %v867_v7 = vpop.xlane.xlu0 %866 }
 0x270   : > { %v877_v8 = vsub.f32 %v720_v50, %v867_v7 }
 0x272   : > { %v881_v9 = vmul.f32 1.442695, %v877_v8 }
 0x274   : > { %1485 = vpow2.f32 %v881_v9 }
 0x27e   : > { %v1486_v10 = vpop.eup %1485 }
 0x27f   : > { %v889_v11 = vsel %vm864_vm3, %v1486_v10, 0.0 }
 0x28a   : > { %890 = vadd.xlane.f32.xlu1 %v889_v11 }
 0x2e2   : > { %v870_v12 = vpop.xlane.xlu1 %869 }
 0x2e3   : > { %v878_v13 = vsub.f32 %v766_v55, %v870_v12 }
 0x2e5   : > { %v883_v14 = vmul.f32 1.442695, %v878_v13 }
 0x2e6   : > { %v873_v15 = vpop.xlane.xlu0 %872  ;;  %v671_v16 = vpop.permute.xlu1 %670 }
 0x2e7   : > { %1487 = vpow2.f32 %v883_v14  ;;  %v879_v17 = vsub.f32 %v812_v60, %v873_v15  ;;  %1392 = vmatpush3.bf16.msra.mxu0 %v671_v16 }
 0x2e8   : > { %1403 = vmatprep.subr.bf16.mxu0 %v1613_v1 }
 0x2e9   : > { %v885_v18 = vmul.f32 1.442695, %v879_v17 }
 0x2ea   : > { %v876_v19 = vpop.xlane.xlu0 %875 }
 0x2eb   : > { %1489 = vpow2.f32 %v885_v18  ;;  %v880_v20 = vsub.f32 %v858_v2, %v876_v19 }
 0x2ed   : > { %v887_v21 = vmul.f32 1.442695, %v880_v20 }
 0x2ef   : > { %1491 = vpow2.f32 %v887_v21 }
 0x2f1   : > { %v1488_v22 = vpop.eup %1487 }
 0x2f2   : > { %v892_v23 = vsel %vm864_vm3, %v1488_v22, 0.0 }
 0x2f3   : > { %893 = vadd.xlane.f32.xlu0 %v892_v23 }
 0x2f5   : > { %v1490_v24 = vpop.eup %1489 }
 0x2f6   : > { %v895_v25 = vsel %vm864_vm3, %v1490_v24, 0.0 }
 0x2f7   : > { %896 = vadd.xlane.f32.xlu1 %v895_v25 }
 0x2f9   : > { %v1492_v26 = vpop.eup %1491 }
 0x2fa   : > { %v898_v27 = vsel %vm864_vm3, %v1492_v26, 0.0 }
 0x2fb   : > { %899 = vadd.xlane.f32.xlu0 %v898_v27 }
 0x308   : > { %676 = vrot.lane.b32.xlu1 %v654_v49, %s1616_s22 }
 0x311   : > { %673 = vrot.lane.b32.xlu0 %v654_v49, %s1617_s24 }
 0x317   : > { %v891_v28 = vpop.xlane.xlu1 %890 }
 0x318   : > { %1493 = vrcp.f32 %v891_v28 }
 0x322   : > { %v1494_v29 = vpop.eup %1493 }
 0x323   : > { %v905_v30 = vmul.f32 %v1494_v29, %v1486_v10 }
 0x325   : > { %v913_v31 = vpack.c.bf16 %v905_v30, %v905_v30  ;;  %909 = vst.msk [vmem:[%s1843_s30] sm:$0xff] %vm864_vm3, %v905_v30 }
 0x327   : > { %1388 = vmatmul.mubr.msk.bf16.vlgmr.msra.gmra.mrb[12].mxu1 %vm864_vm3, %v913_v31 }
 0x328   : > { %1399 = vmatprep.mubr.msk.bf16.mxu1 %vm1614_vm0, %v1613_v1 }
 0x380   : > { %v894_v32 = vpop.xlane.xlu0 %893 }
 0x381   : > { %1495 = vrcp.f32 %v894_v32 }
 0x384   : > { %v897_v33 = vpop.xlane.xlu1 %896 }
 0x385   : > { %1497 = vrcp.f32 %v897_v33 }
 0x388   : > { %v900_v34 = vpop.xlane.xlu0 %899  ;;  %v677_v41 = vpop.permute.xlu1 %676 }
 0x389   : > { %1499 = vrcp.f32 %v900_v34 }
 0x38b   : > { %v1496_v35 = vpop.eup %1495 }
 0x38c   : > { %v906_v36 = vmul.f32 %v1496_v35, %v1488_v22  ;;  %v674_v37 = vpop.permute.xlu0 %673 }
 0x38d   : > { %1398 = vmatpush3.bf16.msra.mxu1 %v674_v37 }
 0x38e   : > { %v914_v38 = vpack.c.bf16 %v906_v36, %v906_v36  ;;  %910 = vst.msk [vmem:[%s1843_s30 + $0x8] sm:$0xff] %vm864_vm3, %v906_v36 }
 0x38f   : > { %v1498_v39 = vpop.eup %1497 }
 0x390   : > { %v907_v40 = vmul.f32 %v1498_v39, %v1490_v24  ;;  %1394 = vmatmul.mubr.msk.bf16.vlgmr.msra.gmra.mrb[16].mxu0 %vm864_vm3, %v914_v38 }
 0x391   : > { %1404 = vmatpush3.bf16.msra.mxu0 %v677_v41  ;;  %1405 = vmatprep.mubr.msk.bf16.mxu0 %vm1614_vm0, %v1613_v1 }
 0x392   : > { %v915_v42 = vpack.c.bf16 %v907_v40, %v907_v40  ;;  %911 = vst.msk [vmem:[%s1843_s30 + $0x10] sm:$0xff] %vm864_vm3, %v907_v40 }
 0x393   : > { %v1500_v43 = vpop.eup %1499 }
 0x394   : > { %v908_v44 = vmul.f32 %v1500_v43, %v1492_v26  ;;  %1400 = vmatmul.mubr.msk.bf16.vlgmr.msra.gmra.mrb[16].mxu1 %vm864_vm3, %v915_v42 }
 0x396   : > { %v916_v45 = vpack.c.bf16 %v908_v44, %v908_v44  ;;  %912 = vst.msk [vmem:[%s1843_s30 + $0x18] sm:$0xff] %vm864_vm3, %v908_v44  ;;  %s1618_s30 = smov [#allocation6]  }
 0x397   : > { %s1505_s11 = sshll.u32 %s1618_s30, 4  ;;  %s1506_s11 = int_to_ptr.vmem [resolvable:$false] %s1505_s11 }
 0x398   : > { %1406 = vmatmul.mubr.msk.bf16.vlgmr.msra.gmra.mrb[20].mxu0 %vm864_vm3, %v916_v45  ;;  %s1507_s0 = scalar_lea.vmem %s1506_s11, 1024  ;;  %p1508_p1 = scmp.lt.s32.totalorder %s1868_s20, %s1506_s11 }
 0x399   : > { %p1509_p2 = scmp.lt.s32.totalorder %s1507_s0, %s1501_s29 }
 0x39b   : > { %p1510_p3 = por %p1509_p2, %p1508_p1 }
 0x39d   : > { %p1511_p5 = pnand %p1510_p3, %p1504_p0 }
 0x3fa   : > { %v954_v46 = vpop.f32.mrb[12].mxu1 }
 0x3fb   : > { %1089 = vst.msk [vmem:[%s1862_s12] sm:$0xff] %vm679_vm2, %v954_v46  ;;  %v1389_v1 = vpop.f32.mrb[13].mxu1 }
 0x3fc   : > { %v957_v47 = vpop.f32.mrb[14].mxu1 }
 0x3fd   : > { %v1390_v48 = vpop.f32.mrb[15].mxu1 }
 0x463   : > { %v997_v49 = vpop.f32.mrb[16].mxu0 }
 0x464   : > { %1514 = shalt.err (!%p1511_p5)
}
 0x465   : > { %s1515_s22 = scalar_lea.hbm %s1875_s5, 512  ;;  %s1519_s30 = scalar_lea.hbm %s1968_s10, 1024 }
 0x466   : > { %p1516_p6 = scmp.ne.s32.totalorder %s1875_s5, %s1515_s22  ;;  %p1520_p10 = scmp.lt.u32.totalorder %s1875_s5, %s1968_s10 }
 0x467   : > { %p1521_p11 = scmp.lt.u32.totalorder %s1519_s30, %s1515_s22  ;;  %p1523_p13 = scmp.lt.u32.totalorder %s1515_s22, %s1875_s5 }
 0x468   : > { %p1517_p7 = pnand %p1516_p6, %p1720_p4 }
 0x469   : > { %p1522_p12 = por %p1521_p11, %p1520_p10 }
 0x46a   : > { %p1518_p9 = pneg %p1517_p7 }
 0x46b   : > { %p1524_p0 = por %p1523_p13, %p1522_p12 }
 0x46d   : > { %p1525_p1 = pnand %p1524_p0, %p1518_p9 }
 0x46f   : > { %1528 = shalt.err (!%p1525_p1)
}
 0x470   : > { %s1619_s0 = smov 128   ;;  %s1620_s29 = smov 256   ;;  %v1395_v50 = vpop.f32.mrb[17].mxu0  ;;  %v1040_v53 = vpop.f32.mrb[16].mxu1  ;;  %vm1094_vm4 = vcmask 130112   ;;  %vm1100_vm5 = vcmask 195712  }
 0x471   : > { %s1621_s1 = smov 8   ;;  %s1978_s19 = scalar_lea.sflag [#allocation7], %s1840_s28  ;;  %v1000_v51 = vpop.f32.mrb[18].mxu0  ;;  %v1401_v54 = vpop.f32.mrb[17].mxu1  ;;  %vm1106_vm6 = vcmask 261312  }
 0x472   : > { %1410 = dma.vmem_to_hbm [thread:$0]  (%p1720_p4), %s1868_s20, 512, %s1875_s5, %s1978_s19, %s1619_s0, %s1620_s29, %s1621_s1   ;;  %v1396_v52 = vpop.f32.mrb[19].mxu0  ;;  %v1043_v55 = vpop.f32.mrb[18].mxu1 }
 0x473   : > { %1091 = vrot.lane.b32.xlu1 %v997_v49, %s1621_s1  ;;  %s1622_s27 = smov 16   ;;  %v1402_v56 = vpop.f32.mrb[19].mxu1  ;;  %v1083_v57 = vpop.f32.mrb[20].mxu0  ;;  %s1623_s22 = smov 24  }
 0x474   : > { %1097 = vrot.lane.b32.xlu0 %v1040_v53, %s1622_s27  ;;  %v1407_v58 = vpop.f32.mrb[21].mxu0  ;;  %s1128_s1 = sshll.u32 %s1862_s12, 4  ;;  %s1979_s20 = sshll.u32 %s1603_s16, 7  ;;  %s1911_s1 = int_to_ptr.vmem [resolvable:$true] %s1128_s1 }
 0x475   : > { %v1086_v59 = vpop.f32.mrb[22].mxu0  ;;  %s1909_s30 = scalar_lea.hbm %s1967_s9, %s1979_s20  ;;  %s1109_s11 = scalar_lea.sflag [#allocation5], %s1840_s28 }
 0x476   : > { %v1408_v60 = vpop.f32.mrb[23].mxu0  ;;  %s1529_s0 = scalar_lea.vmem %s1911_s1, 128  ;;  %s1624_s29 = smov [#allocation4]  }
 0x477   : > { %1103 = vrot.lane.b32.xlu1 %v1083_v57, %s1623_s22  ;;  %p1530_p2 = scmp.ne.s32.totalorder %s1911_s1, %s1529_s0  ;;  %s1533_s16 = sshll.u32 %s1624_s29, 4  ;;  %s1534_s16 = int_to_ptr.vmem [resolvable:$false] %s1533_s16 }
 0x478   : > { %s1535_s19 = scalar_lea.vmem %s1534_s16, 256  ;;  %p1536_p6 = scmp.lt.s32.totalorder %s1911_s1, %s1534_s16 }
 0x479   : > { %p1531_p3 = pnand %p1530_p2, %p1720_p4  ;;  %p1537_p7 = scmp.lt.s32.totalorder %s1535_s19, %s1529_s0 }
 0x47b   : > { %p1532_p5 = pneg %p1531_p3  ;;  %p1538_p9 = por %p1537_p7, %p1536_p6 }
 0x47d   : > { %p1539_p10 = pnand %p1538_p9, %p1532_p5 }
 0x4e5   : > { %v1092_v61 = vpop.permute.xlu1 %1091 }
 0x4e6   : > { %1095 = vst.msk [vmem:[%s1862_s12] sm:$0xff] %vm1094_vm4, %v1092_v61  ;;  %v1098_v62 = vpop.permute.xlu0 %1097 }
 0x4e7   : > { %1101 = vst.msk [vmem:[%s1862_s12] sm:$0xff] %vm1100_vm5, %v1098_v62 }
 0x4e9   : > { %v1104_v63 = vpop.permute.xlu1 %1103 }
 0x4ea   : > { %1107 = vst.msk [vmem:[%s1862_s12] sm:$0xff] %vm1106_vm6, %v1104_v63 }
 0x4eb   : > { %1542 = shalt.err (!%p1539_p10)
}
 0x4ec   : > { %s1543_s28 = scalar_lea.hbm %s1909_s30, 128  ;;  %s1547_s22 = scalar_lea.hbm %s1967_s9, 256 }
 0x4ed   : > { %p1544_p11 = scmp.ne.s32.totalorder %s1909_s30, %s1543_s28  ;;  %p1548_p0 = scmp.lt.u32.totalorder %s1909_s30, %s1967_s9 }
 0x4ee   : > { %p1549_p1 = scmp.lt.u32.totalorder %s1547_s22, %s1543_s28  ;;  %p1551_p3 = scmp.lt.u32.totalorder %s1543_s28, %s1909_s30 }
 0x4ef   : > { %p1545_p12 = pnand %p1544_p11, %p1720_p4 }
 0x4f0   : > { %p1550_p2 = por %p1549_p1, %p1548_p0 }
 0x4f1   : > { %p1546_p13 = pneg %p1545_p12 }
 0x4f2   : > { %p1552_p5 = por %p1551_p3, %p1550_p2 }
 0x4f4   : > { %p1553_p6 = pnand %p1552_p5, %p1546_p13 }
 0x4f6   : > { %1556 = shalt.err (!%p1553_p6)
}
 0x4f7   : > { %1409 = dma.vmem_to_hbm [thread:$0]  (%p1720_p4), %s1911_s1, 128, %s1909_s30, %s1109_s11  }
 0x4f8 PF: > { %p1420_p7 = scmp.ge.s32.totalorder %s1611_s18, 2  ;;  %s1156_s24 = sand.u32 1, %s1591_s13  }
 0x4f9   : > { %s1157_s0 = scalar_lea.sflag [#allocation5], %s1156_s24 }
 0x4fa   : > { %p1414_p9 = pnand %p1420_p7, %p1727_p8 }
 0x4fc   : > { %1582 = dma.done.wait (!%p1414_p9), %s1157_s0, 128  }
 0x4fd   : > { %1584 = vsyncadd (!%p1414_p9), %s1157_s0, 4294967168  ;;  %s1166_s29 = scalar_lea.sflag [#allocation7], %s1156_s24 }
 0x4fe   : > { %1586 = dma.done.wait (!%p1414_p9), %s1166_s29, 512  }
 0x4ff   : > { %1588 = vsyncadd (!%p1414_p9), %s1166_s29, 4294966784  ;;  %s27_s18 = sadd.s32 1, %s1611_s18   ;;  %s1980_s13 = smov %s1595_s14 }
 0x500   : > { %p24_p10 = scmp.ge.s32.totalorder %s27_s18, 4   ;;  %s1981_s14 = smov %s1599_s15 }
 0x501   : > { %s1982_s15 = smov %s1733_s26  ;;  %s1983_s16 = smov %s1607_s17 }
 0x502   : > { %s1984_s17 = smov %s1986_s21  ;;  %26 = sbr.rel (!%p24_p10) target bundleno = 10 (0xa), region = 118 }
 0x509   :  { %1171 = vsyncpa [#allocation5], 1 }
 0x50a   :  { %1173 = vsyncpa [#allocation5 + $0x1], 1 }
 0x50b   :  { %1174 = vsyncpa [#allocation7], 1 }
 0x50c   :  { %1176 = vsyncpa [#allocation7 + $0x1], 1 }

</bundles_post_ra>
